<compile_context>
chip_gen: v7x
topology: tpu7x:2x2x1
jax: 0.10.0
libtpu: 0.0.40
codegen_flags: <defaults>
</compile_context>

<pallas_src>
import jax
import jax.numpy as jnp
from jax.experimental import pallas as pl
from jax.experimental.pallas import tpu as pltpu

BN_EPS = 1e-5


def _round_up(a, m):
    return ((a + m - 1) // m) * m


def _make_encoder_kernel(n_hidden, compute_dtype):
    """Fused MLP kernel: [Linear(+folded BN) -> ReLU] * n_hidden, then one fused
    (mu|logvar) Linear head. Everything is resident in VMEM (small shapes)."""

    def kernel(*refs):
        # refs: x, [w, b] * n_hidden, w_head, b_head, out
        x_ref = refs[0]
        out_ref = refs[-1]
        h = x_ref[...]                      # already f32 from the wrapper
        idx = 1
        for _ in range(n_hidden):
            w, b = refs[idx], refs[idx + 1]
            idx += 2
            h = jnp.dot(h.astype(compute_dtype), w[...],
                        preferred_element_type=jnp.float32) + b[...]
            h = jnp.maximum(h, 0.0)         # ReLU
        w_head, b_head = refs[idx], refs[idx + 1]
        out_ref[...] = jnp.dot(h.astype(compute_dtype), w_head[...],
                               preferred_element_type=jnp.float32) + b_head[...]

    return kernel


def hand_encoder_forward(x, params, *, weights_dtype=jnp.float32, batch_tile=128):
    """Equivalent of HandEncoder.forward({'x': x}) -> dict(mu=..., logvar=...)."""
    B = x.shape[0]
    x2 = x.reshape(B, -1).astype(jnp.float32)
    din0 = x2.shape[1]

    # --- Host-side fusion -------------------------------------------------
    # TODO(synk): BatchNorm1d uses eval-mode (running) statistics; training-mode
    # batch statistics are not replicated here.
    fused = []
    for layer in params["hidden"]:
        scale = layer["gamma"] * jax.lax.rsqrt(layer["var"] + BN_EPS)       # (1, dout)
        w_f = (layer["w"] * scale).astype(weights_dtype)                    # (din, dout)
        b_f = ((layer["b"] - layer["mean"]) * scale + layer["beta"]).astype(jnp.float32)
        fused.append((w_f, b_f))

    latent = params["mu"]["w"].shape[1]
    w_head = jnp.concatenate([params["mu"]["w"], params["logvar"]["w"]],
                             axis=1).astype(weights_dtype)                  # (din, 2*latent)
    b_head = jnp.concatenate([params["mu"]["b"], params["logvar"]["b"]],
                             axis=1).astype(jnp.float32)                    # (1, 2*latent)

    # --- Batch padding / tiling --------------------------------------------
    tb = batch_tile if B > batch_tile else _round_up(B, 8)
    padded_B = _round_up(B, tb)
    if padded_B != B:
        x2 = jnp.pad(x2, ((0, padded_B - B), (0, 0)))
    grid = (padded_B // tb,)

    inputs = [x2]
    for w_f, b_f in fused:
        inputs.extend([w_f, b_f])
    inputs.extend([w_head, b_head])

    n_hidden = len(fused)
    kernel = _make_encoder_kernel(n_hidden, weights_dtype)

    # Activations stream per batch tile; all parameters stay resident in VMEM.
    x_spec = pl.BlockSpec((tb, din0), lambda i: (i, 0))
    param_specs = [pl.BlockSpec(memory_space=pltpu.MemorySpace.VMEM)
                   for _ in range(2 * n_hidden + 2)]
    out_spec = pl.BlockSpec((tb, 2 * latent), lambda i: (i, 0))
    out_shape = jax.ShapeDtypeStruct((padded_B, 2 * latent), jnp.float32)

    out = pl.pallas_call(
        kernel,
        grid=grid,
        in_specs=[x_spec] + param_specs,
        out_specs=out_spec,
        out_shape=out_shape,
        compiler_params=pltpu.CompilerParams(
            dimension_semantics=("parallel",)),   # megacore-shardable batch axis (v7x)
    )(*inputs)

    out = out[:B]
    return dict(mu=out[:, :latent], logvar=out[:, latent:])


def init_params(key, encoder_dims):
    """Deterministic synthetic parameters matching HandEncoder.__init__ shapes.
    PyTorch Linear weights are (out, in); we store them transposed to (in, out)."""
    n_hidden = len(encoder_dims) - 2
    params = {"hidden": []}
    k = key
    for i in range(n_hidden):
        din, dout = encoder_dims[i], encoder_dims[i + 1]
        k, kw, kb, kg, kbt, km, kv = jax.random.split(k, 7)
        w_pt = 0.05 * jax.random.normal(kw, (dout, din), jnp.float32)   # PyTorch layout
        params["hidden"].append(dict(
            w=jnp.transpose(w_pt),                                      # (in, out)
            b=0.05 * jax.random.normal(kb, (1, dout), jnp.float32),
            gamma=1.0 + 0.1 * jax.random.normal(kg, (1, dout), jnp.float32),
            beta=0.05 * jax.random.normal(kbt, (1, dout), jnp.float32),
            mean=0.05 * jax.random.normal(km, (1, dout), jnp.float32),
            var=0.5 + jax.random.uniform(kv, (1, dout), jnp.float32),
        ))
    din, dlat = encoder_dims[-2], encoder_dims[-1]
    k, kwm, kbm, kwl, kbl = jax.random.split(k, 5)
    params["mu"] = dict(
        w=jnp.transpose(0.05 * jax.random.normal(kwm, (dlat, din), jnp.float32)),
        b=0.05 * jax.random.normal(kbm, (1, dlat), jnp.float32))
    params["logvar"] = dict(
        w=jnp.transpose(0.05 * jax.random.normal(kwl, (dlat, din), jnp.float32)),
        b=0.05 * jax.random.normal(kbl, (1, dlat), jnp.float32))
    return params


def reference_forward(x, params):
    """Pure-JAX reference mirroring the PyTorch forward (eval-mode BatchNorm, un-fused)."""
    B = x.shape[0]
    h = x.reshape(B, -1).astype(jnp.float32)
    for layer in params["hidden"]:
        h = h @ layer["w"] + layer["b"]
        h = (h - layer["mean"]) / jnp.sqrt(layer["var"] + BN_EPS) * layer["gamma"] + layer["beta"]
        h = jnp.maximum(h, 0.0)
    mu = h @ params["mu"]["w"] + params["mu"]["b"]
    logvar = h @ params["logvar"]["w"] + params["logvar"]["b"]
    return dict(mu=mu, logvar=logvar)


if __name__ == "__main__":
    # cfg.MODEL.hand_vae.encoder_dims equivalent (synthetic, small):
    encoder_dims = [64, 128, 128, 32]

    key = jax.random.PRNGKey(0)
    kx, kp = jax.random.split(key)
    # data_dict['x'] : (B, 4, 16) -> reshaped to (B, 64) inside forward
    x = jax.random.normal(kx, (2, 4, 16), jnp.float32)
    params = init_params(kp, encoder_dims)

    ref = reference_forward(x, params)

    # f32 weights: BN folding is an exact affine compose -> tight tolerance.
    out = hand_encoder_forward(x, params, weights_dtype=jnp.float32)
    mu = jax.block_until_ready(out["mu"])
    logvar = jax.block_until_ready(out["logvar"])
    assert mu.shape == (2, encoder_dims[-1]) and logvar.shape == (2, encoder_dims[-1])
    assert jnp.allclose(mu, ref["mu"], rtol=1e-3, atol=1e-3)
    assert jnp.allclose(logvar, ref["logvar"], rtol=1e-3, atol=1e-3)

    # bf16 matmul operands (MXU fast path on v6e/v7x) with f32 accumulation;
    # tolerance relaxed for the bf16 weight quantization.
    out_bf16 = hand_encoder_forward(x, params, weights_dtype=jnp.bfloat16)
    mu_b = jax.block_until_ready(out_bf16["mu"])
    lv_b = jax.block_until_ready(out_bf16["logvar"])
    assert jnp.allclose(mu_b, ref["mu"], rtol=3e-2, atol=3e-2)
    assert jnp.allclose(lv_b, ref["logvar"], rtol=3e-2, atol=3e-2)

    print("KERNEL_OK")
</pallas_src>

<mosaic_0001>
module attributes {stable_mosaic.version = 11 : i64} {
  func.func @kernel(%arg0: i32, %arg1: memref<8x64xf32, #tpu.memory_space<vmem>>, %arg2: memref<64x128xf32, #tpu.memory_space<vmem>>, %arg3: memref<1x128xf32, #tpu.memory_space<vmem>>, %arg4: memref<128x128xf32, #tpu.memory_space<vmem>>, %arg5: memref<1x128xf32, #tpu.memory_space<vmem>>, %arg6: memref<128x64xf32, #tpu.memory_space<vmem>>, %arg7: memref<1x64xf32, #tpu.memory_space<vmem>>, %arg8: memref<8x64xf32, #tpu.memory_space<vmem>>) attributes {dimension_semantics = [#tpu.dimension_semantics<parallel>], iteration_bounds = array<i64: 1>, scalar_prefetch = 0 : i64, scratch_operands = 0 : i64, tpu.core_type = #tpu.core_type<tc>, window_params = [{transform_indices = @transform_0, window_bounds = array<i64: 8, 64>}, {pipeline_mode = #tpu.pipeline_mode<synchronous>, transform_indices = @transform_1, window_bounds = array<i64: 64, 128>}, {pipeline_mode = #tpu.pipeline_mode<synchronous>, transform_indices = @transform_2, window_bounds = array<i64: 1, 128>}, {pipeline_mode = #tpu.pipeline_mode<synchronous>, transform_indices = @transform_3, window_bounds = array<i64: 128, 128>}, {pipeline_mode = #tpu.pipeline_mode<synchronous>, transform_indices = @transform_4, window_bounds = array<i64: 1, 128>}, {pipeline_mode = #tpu.pipeline_mode<synchronous>, transform_indices = @transform_5, window_bounds = array<i64: 128, 64>}, {pipeline_mode = #tpu.pipeline_mode<synchronous>, transform_indices = @transform_6, window_bounds = array<i64: 1, 64>}, {transform_indices = @transform_7, window_bounds = array<i64: 8, 64>}]} {
    %c0 = arith.constant 0 : index
    %c0_0 = arith.constant 0 : index
    %0 = vector.load %arg1[%c0, %c0_0] : memref<8x64xf32, #tpu.memory_space<vmem>>, vector<8x64xf32>
    %c0_1 = arith.constant 0 : index
    %c0_2 = arith.constant 0 : index
    %1 = vector.load %arg2[%c0_1, %c0_2] : memref<64x128xf32, #tpu.memory_space<vmem>>, vector<64x128xf32>
    %cst = arith.constant dense<0.000000e+00> : vector<8x128xf32>
    %2 = tpu.matmul %0, %1, %cst {dimension_numbers = #tpu.dot_dimension_numbers<[1], [0], [0], [1], [0, 0, 1, 1], [], []>} : vector<8x64xf32>, vector<64x128xf32>, vector<8x128xf32> -> vector<8x128xf32>
    %c0_3 = arith.constant 0 : index
    %c0_4 = arith.constant 0 : index
    %3 = vector.load %arg3[%c0_3, %c0_4] : memref<1x128xf32, #tpu.memory_space<vmem>>, vector<1x128xf32>
    %4 = vector.broadcast %3 : vector<1x128xf32> to vector<8x128xf32>
    %5 = arith.addf %2, %4 : vector<8x128xf32>
    %cst_5 = arith.constant 0.000000e+00 : f32
    %6 = vector.broadcast %cst_5 : f32 to vector<8x128xf32>
    %7 = arith.maximumf %5, %6 : vector<8x128xf32>
    %c0_6 = arith.constant 0 : index
    %c0_7 = arith.constant 0 : index
    %8 = vector.load %arg4[%c0_6, %c0_7] : memref<128x128xf32, #tpu.memory_space<vmem>>, vector<128x128xf32>
    %cst_8 = arith.constant dense<0.000000e+00> : vector<8x128xf32>
    %9 = tpu.matmul %7, %8, %cst_8 {dimension_numbers = #tpu.dot_dimension_numbers<[1], [0], [0], [1], [0, 0, 1, 1], [], []>} : vector<8x128xf32>, vector<128x128xf32>, vector<8x128xf32> -> vector<8x128xf32>
    %c0_9 = arith.constant 0 : index
    %c0_10 = arith.constant 0 : index
    %10 = vector.load %arg5[%c0_9, %c0_10] : memref<1x128xf32, #tpu.memory_space<vmem>>, vector<1x128xf32>
    %11 = vector.broadcast %10 : vector<1x128xf32> to vector<8x128xf32>
    %12 = arith.addf %9, %11 : vector<8x128xf32>
    %cst_11 = arith.constant 0.000000e+00 : f32
    %13 = vector.broadcast %cst_11 : f32 to vector<8x128xf32>
    %14 = arith.maximumf %12, %13 : vector<8x128xf32>
    %c0_12 = arith.constant 0 : index
    %c0_13 = arith.constant 0 : index
    %15 = vector.load %arg6[%c0_12, %c0_13] : memref<128x64xf32, #tpu.memory_space<vmem>>, vector<128x64xf32>
    %cst_14 = arith.constant dense<0.000000e+00> : vector<8x64xf32>
    %16 = tpu.matmul %14, %15, %cst_14 {dimension_numbers = #tpu.dot_dimension_numbers<[1], [0], [0], [1], [0, 0, 1, 1], [], []>} : vector<8x128xf32>, vector<128x64xf32>, vector<8x64xf32> -> vector<8x64xf32>
    %c0_15 = arith.constant 0 : index
    %c0_16 = arith.constant 0 : index
    %17 = vector.load %arg7[%c0_15, %c0_16] : memref<1x64xf32, #tpu.memory_space<vmem>>, vector<1x64xf32>
    %18 = vector.broadcast %17 : vector<1x64xf32> to vector<8x64xf32>
    %19 = arith.addf %16, %18 : vector<8x64xf32>
    %c0_17 = arith.constant 0 : index
    %c0_18 = arith.constant 0 : index
    %20 = vector.load %arg8[%c0_17, %c0_18] : memref<8x64xf32, #tpu.memory_space<vmem>>, vector<8x64xf32>
    tpu.vector_store %arg8[%c0_17, %c0_18], %19 {strides = array<i32>} : memref<8x64xf32, #tpu.memory_space<vmem>>, vector<8x64xf32>,
    return
  }
  func.func @transform_0(%arg0: i32) -> (i32, i32) {
    %c0_i32 = arith.constant 0 : i32
    %c0_i32_0 = arith.constant 0 : i32
    return %arg0, %c0_i32 : i32, i32
  }
  func.func @transform_1(%arg0: i32) -> (i32, i32) {
    %c0_i32 = arith.constant 0 : i32
    %c0_i32_0 = arith.constant 0 : i32
    %c0_i32_1 = arith.constant 0 : i32
    return %c0_i32, %c0_i32_0 : i32, i32
  }
  func.func @transform_2(%arg0: i32) -> (i32, i32) {
    %c0_i32 = arith.constant 0 : i32
    %c0_i32_0 = arith.constant 0 : i32
    %c0_i32_1 = arith.constant 0 : i32
    return %c0_i32, %c0_i32_0 : i32, i32
  }
  func.func @transform_3(%arg0: i32) -> (i32, i32) {
    %c0_i32 = arith.constant 0 : i32
    %c0_i32_0 = arith.constant 0 : i32
    %c0_i32_1 = arith.constant 0 : i32
    return %c0_i32, %c0_i32_0 : i32, i32
  }
  func.func @transform_4(%arg0: i32) -> (i32, i32) {
    %c0_i32 = arith.constant 0 : i32
    %c0_i32_0 = arith.constant 0 : i32
    %c0_i32_1 = arith.constant 0 : i32
    return %c0_i32, %c0_i32_0 : i32, i32
  }
  func.func @transform_5(%arg0: i32) -> (i32, i32) {
    %c0_i32 = arith.constant 0 : i32
    %c0_i32_0 = arith.constant 0 : i32
    %c0_i32_1 = arith.constant 0 : i32
    return %c0_i32, %c0_i32_0 : i32, i32
  }
  func.func @transform_6(%arg0: i32) -> (i32, i32) {
    %c0_i32 = arith.constant 0 : i32
    %c0_i32_0 = arith.constant 0 : i32
    %c0_i32_1 = arith.constant 0 : i32
    return %c0_i32, %c0_i32_0 : i32, i32
  }
  func.func @transform_7(%arg0: i32) -> (i32, i32) {
    %c0_i32 = arith.constant 0 : i32
    %c0_i32_0 = arith.constant 0 : i32
    return %arg0, %c0_i32 : i32, i32
  }
}

</mosaic_0001>

<bundles_post_ra>
// kernel: tpu_custom_call.1
= control target key start
LH: loop header
LB: loop body
LE: loop exit
PB: predicated region body
PF: predicated region fallthrough
CT: control target
= control target key end

     0   :  { %v544_v3 = vmov 0.0|0.0   ;;  %vm545_vm0 = vmmov 0   ;;  %v546_v6 = vmov 0.0   ;;  %s757_s0 = inlined_call_operand.vmem [shape: f32[8,64], index: 0, kind: input, shape index: {}]   ;;  %s758_s1 = inlined_call_operand.vmem [shape: f32[64,128], index: 1, kind: input, shape index: {}]   ;;  %s759_s2 = inlined_call_operand.vmem [shape: f32[1,128], index: 2, kind: input, shape index: {}]   ;;  %s760_s3 = inlined_call_operand.vmem [shape: f32[128,128], index: 3, kind: input, shape index: {}]   ;;  %s761_s4 = inlined_call_operand.vmem [shape: f32[1,128], index: 4, kind: input, shape index: {}]   ;;  %s762_s5 = inlined_call_operand.vmem [shape: f32[128,64], index: 5, kind: input, shape index: {}]   ;;  %s763_s6 = inlined_call_operand.vmem [shape: f32[1,64], index: 6, kind: input, shape index: {}]   ;;  %s764_s7 = inlined_call_operand.hbm [shape: f32[8,64], index: 7, kind: output, shape index: {}]  }
   0x1   :  { %v28_v0 = vld [vmem:[%s758_s1] sm:$0xff]  ;;  %v29_v1 = vld [vmem:[%s758_s1 + $0x8] sm:$0xff]  ;;  %v30_v2 = vld [vmem:[%s758_s1 + $0x10] sm:$0xff]  ;;  %456 = vmatprep.subr.bf16.mxu0 %v544_v3  ;;  %383 = vmatprep.mubr.msk.f32.mxu0 %vm545_vm0, %v546_v6 }
   0x2   :  { %v457_v4 = vpack.c.bf16 %v29_v1, %v28_v0  ;;  %v31_v5 = vld [vmem:[%s758_s1 + $0x18] sm:$0xff]  ;;  %468 = vmatprep.subr.bf16.mxu1 %v544_v3  ;;  %418 = vmatprep.mubr.msk.f32.mxu1 %vm545_vm0, %v546_v6  ;;  %v118_v8 = vld [vmem:[%s760_s3] sm:$0xff]  ;;  %v119_v9 = vld [vmem:[%s760_s3 + $0x8] sm:$0xff] }
   0x3   :  { %v460_v7 = vpack.c.bf16 %v31_v5, %v30_v2  ;;  %v120_v10 = vld [vmem:[%s760_s3 + $0x10] sm:$0xff]  ;;  %v32_v11 = vld [vmem:[%s758_s1 + $0x20] sm:$0xff]  ;;  %v33_v12 = vld [vmem:[%s758_s1 + $0x28] sm:$0xff]  ;;  %v469_v13 = vpack.c.bf16 %v119_v9, %v118_v8 }
   0x4   :  { %458 = vmatpush3.bf16.msra.mxu0 %v457_v4  ;;  %v121_v14 = vld [vmem:[%s760_s3 + $0x18] sm:$0xff]  ;;  %v463_v16 = vpack.c.bf16 %v33_v12, %v32_v11  ;;  %v122_v17 = vld [vmem:[%s760_s3 + $0x20] sm:$0xff]  ;;  %v123_v18 = vld [vmem:[%s760_s3 + $0x28] sm:$0xff] }
   0x5   :  { %459 = vmatprep.subr.bf16.mxu0 %v544_v3  ;;  %470 = vmatpush3.bf16.msra.mxu1 %v469_v13  ;;  %v472_v15 = vpack.c.bf16 %v121_v14, %v120_v10  ;;  %v34_v19 = vld [vmem:[%s758_s1 + $0x30] sm:$0xff]  ;;  %v35_v20 = vld [vmem:[%s758_s1 + $0x38] sm:$0xff] }
   0x6   :  { %471 = vmatprep.subr.bf16.mxu1 %v544_v3 }
   0x8   :  { %461 = vmatpush3.bf16.msra.mxu0 %v460_v7 }
   0x9   :  { %462 = vmatprep.subr.bf16.mxu0 %v544_v3 }
   0xa   :  { %12 = vsyncpa [#allocation3], 0  ;;  %473 = vmatpush3.bf16.msra.mxu1 %v472_v15  ;;  %v475_v21 = vpack.c.bf16 %v123_v18, %v122_v17  ;;  %v466_v22 = vpack.c.bf16 %v35_v20, %v34_v19  ;;  %v124_v23 = vld [vmem:[%s760_s3 + $0x30] sm:$0xff]  ;;  %v125_v24 = vld [vmem:[%s760_s3 + $0x38] sm:$0xff]  ;;  %vm43_vm1 = vcmask 523264   ;;  %s547_s12 = smov [#allocation2]  }
   0xb   :  { %474 = vmatprep.subr.bf16.mxu1 %v544_v3  ;;  %v478_v25 = vpack.c.bf16 %v125_v24, %v124_v23  ;;  %v27_v26 = vld [vmem:[%s757_s0] sm:$0xff]  ;;  %v127_v28 = vld [vmem:[%s760_s3 + $0x48] sm:$0xff]  ;;  %v128_v30 = vld [vmem:[%s760_s3 + $0x50] sm:$0xff]  ;;  %s312_s13 = sshll.u32 %s547_s12, 4  ;;  %s313_s13 = int_to_ptr.vmem [resolvable:$true] %s312_s13 }
   0xc   :  { %464 = vmatpush3.bf16.msra.mxu0 %v463_v16  ;;  %v126_v27 = vld [vmem:[%s760_s3 + $0x40] sm:$0xff]  ;;  %v129_v31 = vld [vmem:[%s760_s3 + $0x58] sm:$0xff]  ;;  %v131_v34 = vld [vmem:[%s760_s3 + $0x68] sm:$0xff]  ;;  %p525_p1 = scmp.lt.s32.totalorder %s313_s13, %s313_s13 }
   0xd   :  { %465 = vmatprep.subr.bf16.mxu0 %v544_v3  ;;  %v481_v29 = vpack.c.bf16 %v127_v28, %v126_v27  ;;  %v484_v32 = vpack.c.bf16 %v129_v31, %v128_v30  ;;  %v130_v33 = vld [vmem:[%s760_s3 + $0x60] sm:$0xff]  ;;  %v132_v36 = vld [vmem:[%s760_s3 + $0x70] sm:$0xff]  ;;  %v133_v37 = vld [vmem:[%s760_s3 + $0x78] sm:$0xff] }
   0xe   :  { %476 = vmatpush3.bf16.msra.mxu1 %v475_v21  ;;  %v487_v35 = vpack.c.bf16 %v131_v34, %v130_v33  ;;  %v490_v38 = vpack.c.bf16 %v133_v37, %v132_v36  ;;  %v212_v39 = vld [vmem:[%s762_s5] sm:$0xff]  ;;  %v213_v40 = vld [vmem:[%s762_s5 + $0x8] sm:$0xff]  ;;  %v214_v41 = vld [vmem:[%s762_s5 + $0x10] sm:$0xff] }
   0xf   :  { %477 = vmatprep.subr.bf16.mxu1 %v544_v3  ;;  %v493_v42 = vpack.c.bf16 %v213_v40, %v212_v39  ;;  %v215_v43 = vld [vmem:[%s762_s5 + $0x18] sm:$0xff]  ;;  %v216_v45 = vld [vmem:[%s762_s5 + $0x20] sm:$0xff]  ;;  %v217_v46 = vld [vmem:[%s762_s5 + $0x28] sm:$0xff] }
  0x10   :  { %467 = vmatpush3.bf16.msra.mxu0 %v466_v22  ;;  %v496_v44 = vpack.c.bf16 %v215_v43, %v214_v41  ;;  %v499_v47 = vpack.c.bf16 %v217_v46, %v216_v45  ;;  %v218_v48 = vld [vmem:[%s762_s5 + $0x30] sm:$0xff]  ;;  %v219_v49 = vld [vmem:[%s762_s5 + $0x38] sm:$0xff]  ;;  %v220_v51 = vld [vmem:[%s762_s5 + $0x40] sm:$0xff] }
  0x11   :  { %492 = vmatprep.subr.bf16.mxu0 %v544_v3  ;;  %v502_v50 = vpack.c.bf16 %v219_v49, %v218_v48  ;;  %v221_v52 = vld [vmem:[%s762_s5 + $0x48] sm:$0xff]  ;;  %v222_v54 = vld [vmem:[%s762_s5 + $0x50] sm:$0xff]  ;;  %v223_v55 = vld [vmem:[%s762_s5 + $0x58] sm:$0xff] }
  0x12   :  { %479 = vmatpush3.bf16.msra.mxu1 %v478_v25  ;;  %v505_v53 = vpack.c.bf16 %v221_v52, %v220_v51  ;;  %v508_v56 = vpack.c.bf16 %v223_v55, %v222_v54  ;;  %v224_v57 = vld [vmem:[%s762_s5 + $0x60] sm:$0xff]  ;;  %v225_v58 = vld [vmem:[%s762_s5 + $0x68] sm:$0xff]  ;;  %v226_v1 = vld [vmem:[%s762_s5 + $0x70] sm:$0xff] }
  0x13   :  { %384 = vmatmul.mubr.msk.f32.vlgmr.msra.gmra.mrb[0].mxu0 %vm43_vm1, %v27_v26  ;;  %480 = vmatprep.subr.bf16.mxu1 %v544_v3  ;;  %v511_v59 = vpack.c.bf16 %v225_v58, %v224_v57  ;;  %v320_v60 = vld [vmem:[%s759_s2] ss:$0 sm:$0xff]  ;;  %v227_v2 = vld [vmem:[%s762_s5 + $0x78] sm:$0xff]  ;;  %s520_s5 = scalar_lea.vmem %s313_s13, 128 }
  0x14   :  { %453 = vmatprep.mubr.msk.f32.mxu0 %vm545_vm0, %v546_v6  ;;  %494 = vmatpush3.bf16.msra.mxu0 %v493_v42  ;;  %v514_v4 = vpack.c.bf16 %v227_v2, %v226_v1  ;;  %v323_v9 = vld [vmem:[%s763_s6] ss:$0 sm:$0xff]  ;;  %p521_p0 = scmp.ne.s32.totalorder %s313_s13, %s520_s5  ;;  %p526_p2 = scmp.lt.s32.totalorder %s520_s5, %s520_s5 }
  0x15   :  { %495 = vmatprep.subr.bf16.mxu0 %v544_v3 }
  0x16   :  { %482 = vmatpush3.bf16.msra.mxu1 %v481_v29  ;;  %p527_p3 = por %p526_p2, %p525_p1 }
  0x17   :  { %483 = vmatprep.subr.bf16.mxu1 %v544_v3 }
  0x18   :  { %497 = vmatpush3.bf16.msra.mxu0 %v496_v44  ;;  %p528_p4 = pnand %p527_p3, %p521_p0 }
  0x19   :  { %498 = vmatprep.subr.bf16.mxu0 %v544_v3 }
  0x1a   :  { %485 = vmatpush3.bf16.msra.mxu1 %v484_v32 }
  0x1b   :  { %486 = vmatprep.subr.bf16.mxu1 %v544_v3 }
  0x1c   :  { %500 = vmatpush3.bf16.msra.mxu0 %v499_v47 }
  0x1d   :  { %501 = vmatprep.subr.bf16.mxu0 %v544_v3 }
  0x1e   :  { %488 = vmatpush3.bf16.msra.mxu1 %v487_v35 }
  0x1f   :  { %489 = vmatprep.subr.bf16.mxu1 %v544_v3 }
  0x20   :  { %503 = vmatpush3.bf16.msra.mxu0 %v502_v50 }
  0x21   :  { %504 = vmatprep.subr.bf16.mxu0 %v544_v3 }
  0x22   :  { %491 = vmatpush3.bf16.msra.mxu1 %v490_v38 }
  0x24   :  { %506 = vmatpush3.bf16.msra.mxu0 %v505_v53 }
  0x25   :  { %507 = vmatprep.subr.bf16.mxu0 %v544_v3 }
  0x28   :  { %509 = vmatpush3.bf16.msra.mxu0 %v508_v56 }
  0x29   :  { %510 = vmatprep.subr.bf16.mxu0 %v544_v3 }
  0x2c   :  { %512 = vmatpush3.bf16.msra.mxu0 %v511_v59 }
  0x2d   :  { %513 = vmatprep.subr.bf16.mxu0 %v544_v3  ;;  %v322_v3 = vld [vmem:[%s761_s4] ss:$0 sm:$0xff] }
  0x30   :  { %515 = vmatpush3.bf16.msra.mxu0 %v514_v4 }
  0xe6   :  { %v113_v61 = vpop.f32.mrb[0].mxu0 }
  0xe7   :  { %v114_v62 = vadd.f32 %v320_v60, %v113_v61  ;;  %v385_v63 = vpop.f32.mrb[1].mxu0 }
  0xe9   :  { %v117_v0 = vmax.f32 %v114_v62, 0.0 }
  0xeb   :  { %419 = vmatmul.mubr.f32.vlgmr.msra.gmra.mrb[0].mxu1 %v117_v0 }
 0x1be   :  { %v207_v5 = vpop.f32.mrb[0].mxu1 }
 0x1bf   :  { %v208_v6 = vadd.f32 %v322_v3, %v207_v5  ;;  %v420_v7 = vpop.f32.mrb[1].mxu1 }
 0x1c1   :  { %v211_v8 = vmax.f32 %v208_v6, 0.0 }
 0x1c3   :  { %454 = vmatmul.mubr.f32.vlgmr.msra.gmra.mrb[2].mxu0 %v211_v8 }
 0x296   :  { %v301_v10 = vpop.f32.mrb[2].mxu0 }
 0x297   :  { %v302_v11 = vadd.f32 %v323_v9, %v301_v10  ;;  %v455_v12 = vpop.f32.mrb[3].mxu0 }
 0x299   :  { %305 = vst.msk [vmem:[#allocation2] sm:$0xff] %vm43_vm1, %v302_v11 }
 0x29a   :  { %531 = shalt.err (!%p528_p4)
}
 0x29b   :  { %s532_s0 = scalar_lea.hbm %s764_s7, 128 }
 0x29c   :  { %p533_p5 = scmp.ne.s32.totalorder %s764_s7, %s532_s0  ;;  %p536_p6 = scmp.lt.u32.totalorder %s532_s0, %s764_s7 }
 0x29e   :  { %p538_p7 = pnand %p536_p6, %p533_p5 }
 0x2a0   :  { %541 = shalt.err (!%p538_p7)
}
 0x2a1   :  { %315 = dma.vmem_to_hbm [thread:$0]  %s313_s13, 128, %s764_s7, [#allocation3]  }
 0x2a2   :  { %542 = dma.done.wait [#allocation3], 128  }
 0x2a3   :  { %543 = vsyncadd [#allocation3], 4294967168 }
 0x2a4   :  { %319 = vsyncpa [#allocation3], 1 }

</bundles_post_ra>
